<compile_context>
chip_gen: v7x
topology: tpu7x:2x2x1
jax: 0.10.0
libtpu: 0.0.40
codegen_flags: <defaults>
</compile_context>

<pallas_src>
import functools

import jax
import jax.numpy as jnp
from jax import lax
from jax.experimental import pallas as pl
from jax.experimental.pallas import tpu as pltpu


# --------------------------------------------------------------------------
# Pass 1: squeeze (streamed mean over L) + excite MLP (runs once, last step)
# --------------------------------------------------------------------------
def _squeeze_excite_kernel(x_ref, w1_ref, w2_ref, scale_ref, acc_ref,
                           *, l_folded, fold, channels, l_total):
    i = pl.program_id(0)
    tl = x_ref.shape[1]                       # rows per (folded) tile

    @pl.when(i == 0)
    def _():
        acc_ref[...] = jnp.zeros_like(acc_ref)

    x = x_ref[...].astype(jnp.float32)        # (B, TL, Cf); accumulate in f32

    if l_folded % tl != 0:
        # last tile is partial -> zero the padded rows before accumulating
        row = lax.broadcasted_iota(jnp.int32, x.shape, 1)
        x = jnp.where(i * tl + row < l_folded, x, 0.0)

    acc_ref[...] += jnp.sum(x, axis=1)        # (B, Cf)

    @pl.when(i == pl.num_programs(0) - 1)
    def _():
        # un-fold the lane-packed rows back to (B, C) and finish the mean
        acc = acc_ref[...]
        s = acc[:, 0:channels]
        for k in range(1, fold):
            s = s + acc[:, k * channels:(k + 1) * channels]
        s = s * (1.0 / float(l_total))        # mean over the ORIGINAL sequence

        # excitation MLP -- tiny, runs exactly once per kernel (not per tile)
        h = jnp.dot(s, w1_ref[...].astype(jnp.float32),
                    preferred_element_type=jnp.float32)
        h = h * jax.nn.sigmoid(h)             # SiLU
        scale = jax.nn.sigmoid(
            jnp.dot(h, w2_ref[...].astype(jnp.float32),
                    preferred_element_type=jnp.float32))
        if fold > 1:                          # back to the lane-dense width
            scale = jnp.concatenate([scale] * fold, axis=-1)
        scale_ref[...] = scale                # (B, Cf) f32


# --------------------------------------------------------------------------
# Pass 2: streamed rescale  y = x * scale  (scale block stays VMEM-resident)
# --------------------------------------------------------------------------
def _rescale_kernel(x_ref, scale_ref, o_ref):
    x = x_ref[...].astype(jnp.float32)
    o_ref[...] = (x * scale_ref[...][:, None, :]).astype(o_ref.dtype)


def _choose_fold(L, C):
    """Fold sequence rows into lanes so the last dim is a multiple of 128."""
    if C < 128 and 128 % C == 0 and L % (128 // C) == 0:
        return 128 // C
    return 1


def _choose_tile(B, Lf, Cf, itemsize, target_rows=512,
                 budget_bytes=2 * 1024 * 1024):
    """~512 folded rows per step, capped by a modest per-tile VMEM budget."""
    bytes_per_row = B * Cf * max(itemsize, 4)
    tl = min(target_rows, max(8, budget_bytes // max(bytes_per_row, 1)))
    tl = max(8, (tl // 8) * 8)                # keep (8, 128) divisibility
    if Lf <= tl:
        tl = Lf                               # full extent is always legal
    return tl


def se_block(x, w1, w2):
    """SEBlock forward. x: (B, C) or (B, L, C). w1: (C, H), w2: (H, C)."""
    orig_ndim = x.ndim
    if orig_ndim == 2:
        x3 = x[:, None, :]                    # mean over L=1 is the identity
    elif orig_ndim == 3:
        x3 = x
    else:
        raise ValueError("Unsupported input shape for SEBlock")

    B, L, C = x3.shape
    H = w1.shape[1]
    assert w1.shape == (C, H) and w2.shape == (H, C)

    fold = _choose_fold(L, C)
    Lf, Cf = L // fold, C * fold
    xf = x3.reshape(B, Lf, Cf)                # lane-dense view (layout only)

    itemsize = jnp.dtype(x3.dtype).itemsize
    tl = _choose_tile(B, Lf, Cf, itemsize)
    n_tiles = pl.cdiv(Lf, tl)

    # ---- pass 1: streamed squeeze + one-shot excite MLP -> scale (B, Cf) f32
    scale = pl.pallas_call(
        functools.partial(_squeeze_excite_kernel, l_folded=Lf, fold=fold,
                          channels=C, l_total=L),
        out_shape=jax.ShapeDtypeStruct((B, Cf), jnp.float32),
        grid_spec=pltpu.PrefetchScalarGridSpec(
            num_scalar_prefetch=0,
            grid=(n_tiles,),
            in_specs=[
                pl.BlockSpec((B, tl, Cf), lambda i: (0, i, 0)),
                pl.BlockSpec((C, H), lambda i: (0, 0)),   # resident weights
                pl.BlockSpec((H, C), lambda i: (0, 0)),
            ],
            out_specs=pl.BlockSpec((B, Cf), lambda i: (0, 0)),
            scratch_shapes=[pltpu.VMEM((B, Cf), jnp.float32)],
        ),
        compiler_params=pltpu.CompilerParams(
            dimension_semantics=("arbitrary",),           # reduction over L
        ),
        cost_estimate=pl.CostEstimate(
            flops=B * L * C + 4 * B * C * H,
            transcendentals=B * (C + H),
            bytes_accessed=B * L * C * itemsize + 2 * C * H * 4 + B * Cf * 4,
        ),
    )(xf, w1, w2)

    # ---- pass 2: streamed rescale; "parallel" shards tiles over v7x's 2 TCs
    out_f = pl.pallas_call(
        _rescale_kernel,
        out_shape=jax.ShapeDtypeStruct((B, Lf, Cf), x3.dtype),
        grid_spec=pltpu.PrefetchScalarGridSpec(
            num_scalar_prefetch=0,
            grid=(n_tiles,),
            in_specs=[
                pl.BlockSpec((B, tl, Cf), lambda i: (0, i, 0)),
                pl.BlockSpec((B, Cf), lambda i: (0, 0)),  # resident scale
            ],
            out_specs=pl.BlockSpec((B, tl, Cf), lambda i: (0, i, 0)),
        ),
        compiler_params=pltpu.CompilerParams(
            dimension_semantics=("parallel",),
        ),
        cost_estimate=pl.CostEstimate(
            flops=B * L * C,
            transcendentals=0,
            bytes_accessed=2 * B * L * C * itemsize + B * Cf * 4,
        ),
    )(xf, scale)

    out = out_f.reshape(B, L, C)
    if orig_ndim == 2:
        out = out[:, 0, :]
    return out


def _reference(x, w1, w2):
    xf = x.astype(jnp.float32)
    s = xf if x.ndim == 2 else xf.mean(axis=1)
    h = s @ w1.astype(jnp.float32)
    h = h * jax.nn.sigmoid(h)
    scale = jax.nn.sigmoid(h @ w2.astype(jnp.float32))
    return xf * (scale[:, None, :] if x.ndim == 3 else scale)


if __name__ == "__main__":
    # channels=64, reduction=16 -> hidden=4 (consistent with the module)
    B, L, C, R = 2, 8, 64, 16
    H = C // R

    key = jax.random.PRNGKey(0)
    kx, k1, k2 = jax.random.split(key, 3)

    x = jax.random.normal(kx, (B, L, C), dtype=jnp.float32)
    # PyTorch Linear weights are (out, in); stored pre-transposed as (in, out).
    w1 = jax.random.normal(k1, (C, H), dtype=jnp.float32) * (1.0 / jnp.sqrt(C))
    w2 = jax.random.normal(k2, (H, C), dtype=jnp.float32) * (1.0 / jnp.sqrt(H))

    # 3-D branch (small module-consistent shape)
    y = jax.block_until_ready(se_block(x, w1, w2))
    assert jnp.allclose(y, _reference(x, w1, w2), atol=1e-5, rtol=1e-5)

    # 2-D branch (s = x, no mean)
    x2 = jax.random.normal(kx, (B, C), dtype=jnp.float32)
    y2 = jax.block_until_ready(se_block(x2, w1, w2))
    assert jnp.allclose(y2, _reference(x2, w1, w2), atol=1e-5, rtol=1e-5)

    # multi-tile streamed path (grid > 1, lane-folded, "parallel" rescale pass)
    xl = jax.random.normal(kx, (B, 2048, C), dtype=jnp.float32)
    yl = jax.block_until_ready(se_block(xl, w1, w2))
    assert jnp.allclose(yl, _reference(xl, w1, w2), atol=1e-4, rtol=1e-4)

    # bf16 streaming (halves HBM bytes on v6e/v7x; internal math stays f32)
    xb = xl.astype(jnp.bfloat16)
    yb = jax.block_until_ready(se_block(xb, w1, w2))
    assert jnp.allclose(yb.astype(jnp.float32), _reference(xb, w1, w2),
                        atol=3e-2, rtol=3e-2)

    print("KERNEL_OK")
</pallas_src>

<mosaic_0001>
module attributes {stable_mosaic.version = 11 : i64} {
  func.func @_squeeze_excite_kernel(%arg0: i32, %arg1: memref<2x4x128xf32, #tpu.memory_space<vmem>>, %arg2: memref<64x4xf32, #tpu.memory_space<vmem>>, %arg3: memref<4x64xf32, #tpu.memory_space<vmem>>, %arg4: memref<2x128xf32, #tpu.memory_space<vmem>>, %arg5: memref<2x128xf32, #tpu.memory_space<vmem>>) attributes {dimension_semantics = [#tpu.dimension_semantics<arbitrary>], iteration_bounds = array<i64: 1>, scalar_prefetch = 0 : i64, scratch_operands = 1 : i64, tpu.core_type = #tpu.core_type<tc>, window_params = [{transform_indices = @transform_0, window_bounds = array<i64: 2, 4, 128>}, {pipeline_mode = #tpu.pipeline_mode<synchronous>, transform_indices = @transform_1, window_bounds = array<i64: 64, 4>}, {pipeline_mode = #tpu.pipeline_mode<synchronous>, transform_indices = @transform_2, window_bounds = array<i64: 4, 64>}, {pipeline_mode = #tpu.pipeline_mode<synchronous>, transform_indices = @transform_3, window_bounds = array<i64: 2, 128>}]} {
    %c0_i32 = arith.constant 0 : i32
    %0 = arith.cmpi eq, %arg0, %c0_i32 : i32
    %1 = arith.extui %0 : i1 to i32
    %c0_i32_0 = arith.constant 0 : i32
    %2 = arith.cmpi ne, %1, %c0_i32_0 : i32
    scf.if %2 {
      %cst_9 = arith.constant 0.000000e+00 : f32
      %11 = vector.broadcast %cst_9 : f32 to vector<2x128xf32>
      %c0_10 = arith.constant 0 : index
      %c0_11 = arith.constant 0 : index
      %12 = vector.load %arg5[%c0_10, %c0_11] : memref<2x128xf32, #tpu.memory_space<vmem>>, vector<2x128xf32>
      tpu.vector_store %arg5[%c0_10, %c0_11], %11 {strides = array<i32>} : memref<2x128xf32, #tpu.memory_space<vmem>>, vector<2x128xf32>,
    } else {
    }
    %c0 = arith.constant 0 : index
    %c0_1 = arith.constant 0 : index
    %c0_2 = arith.constant 0 : index
    %3 = vector.load %arg1[%c0, %c0_1, %c0_2] : memref<2x4x128xf32, #tpu.memory_space<vmem>>, vector<2x4x128xf32>
    %c0_3 = arith.constant 0 : index
    %c0_4 = arith.constant 0 : index
    %4 = vector.load %arg5[%c0_3, %c0_4] : memref<2x128xf32, #tpu.memory_space<vmem>>, vector<2x128xf32>
    %cst = arith.constant dense<0.000000e+00> : vector<2x128xf32>
    %5 = vector.multi_reduction <add>, %3, %cst [1] : vector<2x4x128xf32> to vector<2x128xf32>
    %6 = arith.addf %4, %5 : vector<2x128xf32>
    %c0_5 = arith.constant 0 : index
    %c0_6 = arith.constant 0 : index
    %7 = vector.load %arg5[%c0_5, %c0_6] : memref<2x128xf32, #tpu.memory_space<vmem>>, vector<2x128xf32>
    tpu.vector_store %arg5[%c0_5, %c0_6], %6 {strides = array<i32>} : memref<2x128xf32, #tpu.memory_space<vmem>>, vector<2x128xf32>,
    %c0_i32_7 = arith.constant 0 : i32
    %8 = arith.cmpi eq, %arg0, %c0_i32_7 : i32
    %9 = arith.extui %8 : i1 to i32
    %c0_i32_8 = arith.constant 0 : i32
    %10 = arith.cmpi ne, %9, %c0_i32_8 : i32
    scf.if %10 {
      %c0_9 = arith.constant 0 : index
      %c0_10 = arith.constant 0 : index
      %11 = vector.load %arg5[%c0_9, %c0_10] : memref<2x128xf32, #tpu.memory_space<vmem>>, vector<2x128xf32>
      %12 = vector.extract_strided_slice %11 {offsets = [0, 0], sizes = [2, 64], strides = [1, 1]} : vector<2x128xf32> to vector<2x64xf32>
      %13 = vector.extract_strided_slice %11 {offsets = [0, 64], sizes = [2, 64], strides = [1, 1]} : vector<2x128xf32> to vector<2x64xf32>
      %14 = arith.addf %12, %13 : vector<2x64xf32>
      %cst_11 = arith.constant 1.250000e-01 : f32
      %15 = vector.broadcast %cst_11 : f32 to vector<2x64xf32>
      %16 = arith.mulf %14, %15 : vector<2x64xf32>
      %c0_12 = arith.constant 0 : index
      %c0_13 = arith.constant 0 : index
      %17 = vector.load %arg2[%c0_12, %c0_13] : memref<64x4xf32, #tpu.memory_space<vmem>>, vector<64x4xf32>
      %cst_14 = arith.constant dense<0.000000e+00> : vector<2x4xf32>
      %18 = tpu.matmul %16, %17, %cst_14 {dimension_numbers = #tpu.dot_dimension_numbers<[1], [0], [0], [1], [0, 0, 1, 1], [], []>} : vector<2x64xf32>, vector<64x4xf32>, vector<2x4xf32> -> vector<2x4xf32>
      %19 = arith.negf %18 : vector<2x4xf32>
      %20 = math.exp %19 : vector<2x4xf32>
      %cst_15 = arith.constant 1.000000e+00 : f32
      %21 = vector.broadcast %cst_15 : f32 to vector<2x4xf32>
      %22 = arith.addf %21, %20 : vector<2x4xf32>
      %23 = arith.divf %21, %22 : vector<2x4xf32>
      %24 = arith.mulf %18, %23 : vector<2x4xf32>
      %c0_16 = arith.constant 0 : index
      %c0_17 = arith.constant 0 : index
      %25 = vector.load %arg3[%c0_16, %c0_17] : memref<4x64xf32, #tpu.memory_space<vmem>>, vector<4x64xf32>
      %cst_18 = arith.constant dense<0.000000e+00> : vector<2x64xf32>
      %26 = tpu.matmul %24, %25, %cst_18 {dimension_numbers = #tpu.dot_dimension_numbers<[1], [0], [0], [1], [0, 0, 1, 1], [], []>} : vector<2x4xf32>, vector<4x64xf32>, vector<2x64xf32> -> vector<2x64xf32>
      %27 = arith.negf %26 : vector<2x64xf32>
      %28 = math.exp %27 : vector<2x64xf32>
      %cst_19 = arith.constant 1.000000e+00 : f32
      %29 = vector.broadcast %cst_19 : f32 to vector<2x64xf32>
      %30 = arith.addf %29, %28 : vector<2x64xf32>
      %31 = arith.divf %29, %30 : vector<2x64xf32>
      %32 = tpu.concatenate %31, %31 in 1 : vector<2x64xf32>, vector<2x64xf32> -> vector<2x128xf32>
      %c0_20 = arith.constant 0 : index
      %c0_21 = arith.constant 0 : index
      %33 = vector.load %arg4[%c0_20, %c0_21] : memref<2x128xf32, #tpu.memory_space<vmem>>, vector<2x128xf32>
      tpu.vector_store %arg4[%c0_20, %c0_21], %32 {strides = array<i32>} : memref<2x128xf32, #tpu.memory_space<vmem>>, vector<2x128xf32>,
    } else {
    }
    return
  }
  func.func @transform_0(%arg0: i32) -> (i32, i32, i32) {
    %c0_i32 = arith.constant 0 : i32
    %c0_i32_0 = arith.constant 0 : i32
    %c0_i32_1 = arith.constant 0 : i32
    return %c0_i32, %arg0, %c0_i32_0 : i32, i32, i32
  }
  func.func @transform_1(%arg0: i32) -> (i32, i32) {
    %c0_i32 = arith.constant 0 : i32
    %c0_i32_0 = arith.constant 0 : i32
    %c0_i32_1 = arith.constant 0 : i32
    return %c0_i32, %c0_i32_0 : i32, i32
  }
  func.func @transform_2(%arg0: i32) -> (i32, i32) {
    %c0_i32 = arith.constant 0 : i32
    %c0_i32_0 = arith.constant 0 : i32
    %c0_i32_1 = arith.constant 0 : i32
    return %c0_i32, %c0_i32_0 : i32, i32
  }
  func.func @transform_3(%arg0: i32) -> (i32, i32) {
    %c0_i32 = arith.constant 0 : i32
    %c0_i32_0 = arith.constant 0 : i32
    %c0_i32_1 = arith.constant 0 : i32
    return %c0_i32, %c0_i32_0 : i32, i32
  }
}

</mosaic_0001>

<bundles_post_ra>
// kernel: tpu_custom_call.1
= control target key start
LH: loop header
LB: loop body
LE: loop exit
PB: predicated region body
PF: predicated region fallthrough
CT: control target
= control target key end

     0   :  { %vm23_vm0 = vcmask 1043456   ;;  %v337_v2 = vmov 0.0   ;;  %v338_v8 = vmov 0.0|0.0   ;;  %s412_s0 = inlined_call_operand.vmem [shape: f32[2,4,128], index: 0, kind: input, shape index: {}]   ;;  %s413_s1 = inlined_call_operand.vmem [shape: f32[64,4], index: 1, kind: input, shape index: {}]   ;;  %s414_s2 = inlined_call_operand.vmem [shape: f32[4,64], index: 2, kind: input, shape index: {}]   ;;  %s415_s3 = inlined_call_operand.hbm [shape: f32[2,128], index: 3, kind: output, shape index: {}]  }
   0x1   :  { %v20_v0 = vld [vmem:[%s412_s0] sm:$0xf]  ;;  %v21_v1 = vld [vmem:[%s412_s0 + $0x4] sm:$0xf]  ;;  %19 = vst [vmem:[#allocation2] sm:$0x3] %v337_v2  ;;  %283 = vmatprep.subr.mxu1 %v337_v2  ;;  %288 = vmatprep.subr.bf16.mxu0 %v338_v8 }
   0x2   :  { %v24_v3 = vsel %vm23_vm0, %v20_v0, 0.0  ;;  %v31_v4 = vsel %vm23_vm0, %v21_v1, 0.0  ;;  %v55_v5 = vld [vmem:[%s413_s1] sm:$0xff]  ;;  %v56_v9 = vld [vmem:[%s413_s1 + $0x8] sm:$0xff]  ;;  %v57_v10 = vld [vmem:[%s413_s1 + $0x10] sm:$0xff] }
   0x3   :  { %v25_v6 = vrot.slane %v24_v3, 4  ;;  %v32_v7 = vrot.slane %v31_v4, 4  ;;  %v58_v11 = vld [vmem:[%s413_s1 + $0x18] sm:$0xff]  ;;  %v289_v12 = vpack.c.bf16 %v56_v9, %v55_v5 }
   0x4   :  { %8 = vsyncpa [#allocation4], 0  ;;  %v292_v15 = vpack.c.bf16 %v58_v11, %v57_v10  ;;  %v59_v18 = vld [vmem:[%s413_s1 + $0x20] sm:$0xff]  ;;  %v60_v19 = vld [vmem:[%s413_s1 + $0x28] sm:$0xff]  ;;  %vm40_vm1 = vcmask 1041409   ;;  %vm339_vm2 = vmmov 0  }
   0x5   :  { %v26_v13 = vadd.f32 %v25_v6, %v24_v3  ;;  %v33_v14 = vadd.f32 %v32_v7, %v31_v4  ;;  %290 = vmatpush3.bf16.msra.mxu0 %v289_v12  ;;  %v295_v22 = vpack.c.bf16 %v60_v19, %v59_v18  ;;  %v61_v25 = vld [vmem:[%s413_s1 + $0x30] sm:$0xff]  ;;  %v62_v26 = vld [vmem:[%s413_s1 + $0x38] sm:$0xff]  ;;  %280 = vmatprep.mubr.msk.f32.mxu0 %vm339_vm2, %v337_v2  ;;  %s340_s4 = smov 64   ;;  %vm63_vm3 = vcmask 523264   ;;  %v144_v37 = vld [vmem:[%s414_s2] sm:$0xf] }
   0x6   :  { %291 = vmatprep.subr.bf16.mxu0 %v338_v8  ;;  %v298_v30 = vpack.c.bf16 %v62_v26, %v61_v25  ;;  %285 = vmatprep.mubr.msk.f32.mxu1 %vm339_vm2, %v337_v2  ;;  %vm145_vm4 = vcmask 31744   ;;  %s341_s2 = smov [#allocation3]  }
   0x7   :  { %v27_v16 = vrot.slane %v26_v13, 2  ;;  %v34_v17 = vrot.slane %v33_v14, 2  ;;  %284 = vmatpush3.msk.msra.mxu1 %vm23_vm0, %v144_v37  ;;  %s240_s6 = sshll.u32 %s341_s2, 4  ;;  %s241_s6 = int_to_ptr.vmem [resolvable:$true] %s240_s6 }
   0x8   :  { %v22_v27 = vld [vmem:[#allocation2] sm:$0x3]  ;;  %s313_s7 = scalar_lea.vmem %s241_s6, 32  ;;  %p318_p1 = scmp.lt.s32.totalorder %s241_s6, %s241_s6 }
   0x9   :  { %v28_v20 = vadd.f32 %v27_v16, %v26_v13  ;;  %v35_v21 = vadd.f32 %v34_v17, %v33_v14  ;;  %293 = vmatpush3.bf16.msra.mxu0 %v292_v15  ;;  %p314_p0 = scmp.ne.s32.totalorder %s241_s6, %s313_s7  ;;  %p319_p2 = scmp.lt.s32.totalorder %s313_s7, %s313_s7 }
   0xa   :  { %294 = vmatprep.subr.bf16.mxu0 %v338_v8 }
   0xb   :  { %v29_v23 = vrot.slane %v28_v20, 1  ;;  %v36_v24 = vrot.slane %v35_v21, 1  ;;  %p320_p3 = por %p319_p2, %p318_p1 }
   0xd   :  { %v30_v28 = vadd.f32 %v29_v23, %v28_v20  ;;  %v37_v29 = vadd.f32 %v36_v24, %v35_v21  ;;  %296 = vmatpush3.bf16.msra.mxu0 %v295_v22  ;;  %p321_p4 = pnand %p320_p3, %p314_p0 }
   0xe   :  { %297 = vmatprep.subr.bf16.mxu0 %v338_v8 }
   0xf   :  { %v41_v31 = vsel %vm40_vm1, %v37_v29, %v30_v28 }
  0x10   :  { %v43_v32 = vadd.f32 %v41_v31, %v22_v27 }
  0x11   :  { %299 = vmatpush3.bf16.msra.mxu0 %v298_v30 }
  0x12   :  { %44 = vst [vmem:[#allocation2] sm:$0x3] %v43_v32 }
  0x19   :  { %v48_v33 = vld [vmem:[#allocation2] sm:$0x3] }
  0x1a   :  { %50 = vrot.lane.b32.xlu0 %v48_v33, %s340_s4 }
  0x8c   :  { %v51_v34 = vpop.permute.xlu0 %50 }
  0x8d   :  { %v53_v35 = vadd.f32 %v51_v34, %v48_v33 }
  0x8f   :  { %v54_v36 = vmul.f32 0.125, %v53_v35 }
  0x91   :  { %281 = vmatmul.mubr.msk.f32.vlgmr.msra.gmra.mrb[0].mxu0 %vm63_vm3, %v54_v36 }
 0x164   :  { %v133_v38 = vpop.f32.mrb[0].mxu0 }
 0x165   :  { %v249_v39 = vmul.f32 -1.442695, %v133_v38  ;;  %v282_v40 = vpop.f32.mrb[1].mxu0 }
 0x167   :  { %305 = vpow2.f32 %v249_v39 }
 0x171   :  { %v306_v41 = vpop.eup %305 }
 0x172   :  { %v140_v42 = vadd.f32 1.0, %v306_v41 }
 0x174   :  { %307 = vrcp.f32 %v140_v42 }
 0x17e   :  { %v308_v43 = vpop.eup %307 }
 0x17f   :  { %v143_v44 = vmul.f32 %v308_v43, %v133_v38 }
 0x181   :  { %286 = vmatmul.mubr.msk.f32.vlgmr.msra.gmra.mrb[0].mxu1 %vm145_vm4, %v143_v44 }
 0x254   :  { %v218_v45 = vpop.f32.mrb[0].mxu1 }
 0x255   :  { %v252_v46 = vmul.f32 -1.442695, %v218_v45  ;;  %v287_v47 = vpop.f32.mrb[1].mxu1 }
 0x257   :  { %309 = vpow2.f32 %v252_v46 }
 0x261   :  { %v310_v48 = vpop.eup %309 }
 0x262   :  { %v225_v49 = vadd.f32 1.0, %v310_v48 }
 0x264   :  { %311 = vrcp.f32 %v225_v49 }
 0x26e   :  { %v312_v50 = vpop.eup %311 }
 0x26f   :  { %229 = vrot.lane.b32.xlu0 %v312_v50, %s340_s4 }
 0x2e1   :  { %v230_v51 = vpop.permute.xlu0 %229 }
 0x2e2   :  { %v232_v52 = vsel %vm63_vm3, %v312_v50, %v230_v51 }
 0x2e3   :  { %233 = vst [vmem:[#allocation3] sm:$0x3] %v232_v52 }
 0x2e4   :  { %324 = shalt.err (!%p321_p4)
}
 0x2e5   :  { %s325_s10 = scalar_lea.hbm %s415_s3, 32 }
 0x2e6   :  { %p326_p5 = scmp.ne.s32.totalorder %s415_s3, %s325_s10  ;;  %p329_p6 = scmp.lt.u32.totalorder %s325_s10, %s415_s3 }
 0x2e8   :  { %p331_p7 = pnand %p329_p6, %p326_p5 }
 0x2ea   :  { %334 = shalt.err (!%p331_p7)
}
 0x2eb   :  { %243 = dma.vmem_to_hbm [thread:$0]  %s241_s6, 32, %s415_s3, [#allocation4]  }
 0x2ec   :  { %335 = dma.done.wait [#allocation4], 32  }
 0x2ed   :  { %336 = vsyncadd [#allocation4], 4294967264 }
 0x2ee   :  { %247 = vsyncpa [#allocation4], 1 }

</bundles_post_ra>
